<compile_context>
chip_gen: v6e
topology: v6e:2x2x1
jax: 0.10.0
libtpu: 0.0.40
codegen_flags: <defaults>
</compile_context>

<pallas_src>
import math

import jax
import jax.numpy as jnp
import numpy as np
from jax.experimental import pallas as pl
from jax.experimental.pallas import tpu as pltpu


def _round_up(x, m):
    return (x + m - 1) // m * m


# ---------------------------------------------------------------------------
# Kernel 1: feature projection  xwc = x @ (c*W)   (reassociated Linear, no bias)
# ---------------------------------------------------------------------------
def _project_kernel(x_ref, w_ref, o_ref):
    o_ref[...] = jnp.dot(
        x_ref[...], w_ref[...], preferred_element_type=jnp.float32
    ).astype(o_ref.dtype)


# ---------------------------------------------------------------------------
# Kernel 2: tiled diffusion + combine
#   out[i] = sum_k (t*A)[i, k] @ xwc[k]  +  xwc[i]  +  b
# ---------------------------------------------------------------------------
def _diffusion_kernel(a_ref, xwk_ref, xwi_ref, b_ref, o_ref, acc_ref):
    k = pl.program_id(1)

    @pl.when(k == 0)
    def _():
        acc_ref[...] = jnp.zeros_like(acc_ref)

    acc_ref[...] += jnp.dot(
        a_ref[...], xwk_ref[...], preferred_element_type=jnp.float32
    )

    @pl.when(k == pl.num_programs(1) - 1)
    def _():
        o_ref[...] = (
            acc_ref[...] + xwi_ref[...].astype(jnp.float32) + b_ref[...]
        ).astype(o_ref.dtype)


def gcnplus_forward(x, edge_index, w, b, t, *, tile=256, use_bf16_adjacency=False):
    """GCNPlusConv forward.

    x: (N, Cin) f32, edge_index: (2, E) int32 (row=source, col=target),
    w: (Cin, Cout) f32 (transposed vs torch.nn.Linear.weight), b: (Cout,) f32,
    t: scalar diffusion-time parameter.
    """
    N, c_in = x.shape
    c_out = w.shape[1]
    row, col = edge_index[0], edge_index[1]

    # --- plain-JAX glue: symmetric GCN normalization + dense adjacency -------
    deg = jnp.zeros((N,), jnp.float32).at[col].add(
        jnp.ones_like(col, dtype=jnp.float32)
    )
    deg_inv_sqrt = jnp.power(deg, -0.5)
    norm = deg_inv_sqrt[row] * deg_inv_sqrt[col]

    t_f = jnp.asarray(t, jnp.float32)
    c = jnp.exp(-t_f)  # exp(-t) hoisted out of the kernels entirely

    # Padded sizes: lane (feature) dims -> multiples of 128, node dim -> tile.
    c_in_p = _round_up(c_in, 128)
    c_out_p = _round_up(c_out, 128)
    n_p = _round_up(N, tile)
    n_tiles = n_p // tile

    feat_dtype = jnp.bfloat16 if use_bf16_adjacency else jnp.float32

    # Dense normalized adjacency scaled by t:  A_t[target, source] = t * norm.
    # Built directly at padded size and in the matmul dtype (padded rows/cols
    # stay exactly zero, HBM never sees an extra f32 copy in the bf16 path).
    a_t = jnp.zeros((n_p, n_p), feat_dtype).at[col, row].add(
        (t_f * norm).astype(feat_dtype)
    )

    # Zero-padded x / (c*W) / b, lane-dense.
    x_p = jnp.zeros((n_p, c_in_p), jnp.float32).at[:N, :c_in].set(
        x.astype(jnp.float32)
    )
    w_p = jnp.zeros((c_in_p, c_out_p), jnp.float32).at[:c_in, :c_out].set(
        (c * w).astype(jnp.float32)
    )
    b_p = jnp.zeros((1, c_out_p), jnp.float32).at[0, :c_out].set(
        b.astype(jnp.float32)
    )

    # --- Pallas: projection xwc = x @ (c*W); W resident across the grid ------
    xwc = pl.pallas_call(
        _project_kernel,
        out_shape=jax.ShapeDtypeStruct((n_p, c_out_p), feat_dtype),
        grid_spec=pltpu.PrefetchScalarGridSpec(
            num_scalar_prefetch=0,
            grid=(n_tiles,),
            in_specs=[
                pl.BlockSpec((tile, c_in_p), lambda i: (i, 0)),
                pl.BlockSpec((c_in_p, c_out_p), lambda i: (0, 0)),
            ],
            out_specs=pl.BlockSpec((tile, c_out_p), lambda i: (i, 0)),
        ),
        compiler_params=pltpu.CompilerParams(
            dimension_semantics=("parallel",),
            vmem_limit_bytes=32 * 1024 * 1024,
        ),
    )(x_p, w_p)

    # --- Pallas: tiled diffusion + combine ------------------------------------
    out_p = pl.pallas_call(
        _diffusion_kernel,
        out_shape=jax.ShapeDtypeStruct((n_p, c_out_p), jnp.float32),
        grid_spec=pltpu.PrefetchScalarGridSpec(
            num_scalar_prefetch=0,
            grid=(n_tiles, n_tiles),
            in_specs=[
                pl.BlockSpec((tile, tile), lambda i, k: (i, k)),      # t*A block
                pl.BlockSpec((tile, c_out_p), lambda i, k: (k, 0)),   # xwc[k]
                pl.BlockSpec((tile, c_out_p), lambda i, k: (i, 0)),   # xwc[i] (resident over k)
                pl.BlockSpec((1, c_out_p), lambda i, k: (0, 0)),      # bias (resident)
            ],
            out_specs=pl.BlockSpec((tile, c_out_p), lambda i, k: (i, 0)),
            scratch_shapes=[pltpu.VMEM((tile, c_out_p), jnp.float32)],
        ),
        compiler_params=pltpu.CompilerParams(
            dimension_semantics=("parallel", "arbitrary"),
            vmem_limit_bytes=32 * 1024 * 1024,
        ),
    )(a_t, xwc, xwc, b_p)

    return out_p[:N, :c_out]


def gcnplus_reference(x, edge_index, w, b, t):
    """Pure-JAX reference mirroring the PyTorch forward (f32 end-to-end)."""
    N = x.shape[0]
    row, col = edge_index[0], edge_index[1]
    deg = jnp.zeros((N,), x.dtype).at[col].add(jnp.ones_like(col, dtype=x.dtype))
    deg_inv_sqrt = jnp.power(deg, -0.5)
    norm = deg_inv_sqrt[row] * deg_inv_sqrt[col]
    msgs = norm[:, None] * x[row]                  # message(x_j, norm)
    x1 = jnp.zeros_like(x).at[col].add(msgs)       # aggr='add' at targets
    c = jnp.exp(-t)
    y = c * x + c * t * x1
    return y @ w + b


if __name__ == "__main__":
    # Small, deterministic setup consistent with GCNPlusConv(in_channels, out_channels, init_t)
    N, C_IN, C_OUT = 600, 32, 16
    INIT_T = 1.0
    TILE = 256  # pads N -> 768, grid (3, 3); 256-wide tiles sized for v7x VMEM

    key = jax.random.PRNGKey(0)
    kx, kw, kb = jax.random.split(key, 3)

    x = jax.random.normal(kx, (N, C_IN), dtype=jnp.float32)

    # Deterministic graph: bidirectional ring (every node has in-degree >= 2)
    # plus extra random edges.
    rng = np.random.default_rng(0)
    ring_src = np.concatenate([np.arange(N), np.arange(N)])
    ring_dst = np.concatenate([(np.arange(N) + 1) % N, (np.arange(N) - 1) % N])
    rnd_src = rng.integers(0, N, size=2 * N)
    rnd_dst = rng.integers(0, N, size=2 * N)
    src = np.concatenate([ring_src, rnd_src])
    dst = np.concatenate([ring_dst, rnd_dst])
    edge_index = jnp.asarray(np.stack([src, dst]), dtype=jnp.int32)  # (2, E)

    # Deterministic Linear init (PyTorch-style uniform bound); W stored (Cin, Cout).
    bound = 1.0 / math.sqrt(C_IN)
    w = jax.random.uniform(kw, (C_IN, C_OUT), jnp.float32, -bound, bound)
    b = jax.random.uniform(kb, (C_OUT,), jnp.float32, -bound, bound)
    t = jnp.float32(INIT_T)  # TDConv.t parameter, init to init_t

    ref = gcnplus_reference(x, edge_index, w, b, t)

    # f32 path: tight match against the pure-JAX reference.
    out = gcnplus_forward(x, edge_index, w, b, t, tile=TILE, use_bf16_adjacency=False)
    out = jax.block_until_ready(out)
    assert out.shape == (N, C_OUT)
    np.testing.assert_allclose(np.asarray(out), np.asarray(ref), rtol=3e-5, atol=3e-5)

    # bf16-adjacency path: halves dominant HBM traffic; f32 accumulation,
    # so only input-rounding error vs the f32 reference.
    out_bf16 = gcnplus_forward(x, edge_index, w, b, t, tile=TILE, use_bf16_adjacency=True)
    out_bf16 = jax.block_until_ready(out_bf16)
    np.testing.assert_allclose(np.asarray(out_bf16), np.asarray(ref), rtol=2e-2, atol=1e-2)

    print("KERNEL_OK")
</pallas_src>

<mosaic_0001>
module attributes {stable_mosaic.version = 11 : i64} {
  func.func @_project_kernel(%arg0: i32, %arg1: memref<256x128xf32, #tpu.memory_space<vmem>>, %arg2: memref<128x128xf32, #tpu.memory_space<vmem>>, %arg3: memref<256x128xf32, #tpu.memory_space<vmem>>) attributes {dimension_semantics = [#tpu.dimension_semantics<parallel>], iteration_bounds = array<i64: 3>, scalar_prefetch = 0 : i64, scratch_operands = 0 : i64, tpu.core_type = #tpu.core_type<tc>, window_params = [{transform_indices = @transform_0, window_bounds = array<i64: 256, 128>}, {pipeline_mode = #tpu.pipeline_mode<synchronous>, transform_indices = @transform_1, window_bounds = array<i64: 128, 128>}, {transform_indices = @transform_2, window_bounds = array<i64: 256, 128>}]} {
    %c0 = arith.constant 0 : index
    %c0_0 = arith.constant 0 : index
    %0 = vector.load %arg1[%c0, %c0_0] : memref<256x128xf32, #tpu.memory_space<vmem>>, vector<256x128xf32>
    %c0_1 = arith.constant 0 : index
    %c0_2 = arith.constant 0 : index
    %1 = vector.load %arg2[%c0_1, %c0_2] : memref<128x128xf32, #tpu.memory_space<vmem>>, vector<128x128xf32>
    %cst = arith.constant dense<0.000000e+00> : vector<256x128xf32>
    %2 = tpu.matmul %0, %1, %cst {dimension_numbers = #tpu.dot_dimension_numbers<[1], [0], [0], [1], [0, 0, 1, 1], [], []>} : vector<256x128xf32>, vector<128x128xf32>, vector<256x128xf32> -> vector<256x128xf32>
    %c0_3 = arith.constant 0 : index
    %c0_4 = arith.constant 0 : index
    %3 = vector.load %arg3[%c0_3, %c0_4] : memref<256x128xf32, #tpu.memory_space<vmem>>, vector<256x128xf32>
    tpu.vector_store %arg3[%c0_3, %c0_4], %2 {strides = array<i32>} : memref<256x128xf32, #tpu.memory_space<vmem>>, vector<256x128xf32>,
    return
  }
  func.func @transform_0(%arg0: i32) -> (i32, i32) {
    %c0_i32 = arith.constant 0 : i32
    %c0_i32_0 = arith.constant 0 : i32
    return %arg0, %c0_i32 : i32, i32
  }
  func.func @transform_1(%arg0: i32) -> (i32, i32) {
    %c0_i32 = arith.constant 0 : i32
    %c0_i32_0 = arith.constant 0 : i32
    %c0_i32_1 = arith.constant 0 : i32
    return %c0_i32, %c0_i32_0 : i32, i32
  }
  func.func @transform_2(%arg0: i32) -> (i32, i32) {
    %c0_i32 = arith.constant 0 : i32
    %c0_i32_0 = arith.constant 0 : i32
    return %arg0, %c0_i32 : i32, i32
  }
}

</mosaic_0001>

<bundles_post_ra>
// kernel: tpu_custom_call.1
= control target key start
LH: loop header
LB: loop body
LE: loop exit
PB: predicated region body
PF: predicated region fallthrough
CT: control target
= control target key end

     0   :  { %7 = vsyncpa [#allocation3], 0  ;;  %s1220_s0 = inlined_call_operand.hbm [shape: f32[768,128], index: 0, kind: input, shape index: {}]   ;;  %s1221_s1 = inlined_call_operand.hbm [shape: f32[128,128], index: 1, kind: input, shape index: {}]   ;;  %s1222_s2 = inlined_call_operand.hbm [shape: f32[768,128], index: 2, kind: output, shape index: {}]  }
   0x1   :  { %9 = vsyncpa [#allocation3 + $0x1], 0 }
   0x2   :  { %10 = vsyncpa [#allocation6], 0 }
   0x3   :  { %11 = vsyncpa [#allocation4], 0 }
   0x4   :  { %13 = vsyncpa [#allocation4 + $0x1], 0  ;;  %s966_s9 = smov 0   ;;  %s968_s10 = smov 0  }
   0x5   :  { %s970_s11 = smov 0   ;;  %s972_s12 = smov 0  }
   0x6 LB: > { %s987_s13 = sadd.s32 4294967295, %s942_s12   ;;  %s581_s14 = sadd.s32 4294967294, %s942_s12   ;;  %s942_s12 = sphi %s972_s12, %s1243_s12   ;;  %s938_s11 = sphi %s970_s11, %s1242_s11   ;;  %s934_s10 = sphi %s968_s10, %s1241_s10   ;;  %s930_s9 = sphi %s966_s9, %s1240_s9  }
   0x7   : > { %p39_p0 = scmp.ne.s32.totalorder %s934_s10, %s930_s9  ;;  %p1223_p1 = scmp.eq.s32.totalorder %s987_s13, 0 }
   0x8   : > { %p90_p3 = scmp.eq.s32.totalorder %s581_s14, 2  ;;  %p582_p5 = scmp.ge.s32.totalorder %s942_s12, 1 }
   0x9   : > { %p996_p4 = por %p1223_p1, %p39_p0  ;;  %p97_p7 = scmp.lt.s32.totalorder %s942_s12, 4 }
   0xa   : > { %p1001_p6 = por %p90_p3, %p39_p0  ;;  %s944_s18 = smov [#allocation5]  }
   0xb   : > { %s1227_s15 = scalar_select %p996_p4, 1, 0 }
   0xc   : > { %s1228_s16 = scalar_select %p1001_p6, 1, 0 }
   0xd   : > { %p1006_p8 = pnand %p582_p5, %p97_p7  ;;  %s109_s19 = sshll.u32 %s944_s18, 4  ;;  %s110_s19 = int_to_ptr.vmem [resolvable:$true] %s109_s19 }
   0xe   : > { %s1019_s21 = sadd.s32 1, %s942_s12   ;;  %s26_s22 = sadd.s32 1, %s938_s11 }
   0xf   : > { %s1229_s17 = scalar_select %p1006_p8, 1, 0 }
  0x10   : > { %p767_p9 = pneg %p1006_p8  ;;  %s23_s23 = ssub.s32 %s942_s12, %s1019_s21 }
  0x11   : > { %s831_s24 = scalar_lea.vmem %s110_s19, 2048  ;;  %p839_p3 = scmp.lt.s32.totalorder %s110_s19, %s110_s19 }
  0x12   : > { %p1014_p10 = pnand %p767_p9, %p1223_p1  ;;  %p832_p12 = scmp.ne.s32.totalorder %s110_s19, %s831_s24 }
  0x13   : > { %p840_p5 = scmp.lt.s32.totalorder %s831_s24, %s831_s24 }
  0x14   : > { %p822_p11 = pneg %p1014_p10 }
  0x15   : > { %p841_p7 = por %p840_p5, %p839_p3 }
  0x16   : > { %p834_p13 = pnand %p832_p12, %p822_p11 }
  0x18   : > { %p835_p0 = pneg %p834_p13 }
  0x1a   : > { %p842_p2 = pnand %p841_p7, %p835_p0 }
  0x1c   : > { %845 = shalt.err (!%p842_p2)
}
  0x1d   : > { %s945_s25 = smov 128   ;;  %s946_s26 = smov 8  }
  0x1e   : > { %770 = dma.hbm_to_vmem [thread:$0]  (!%p1014_p10), %s1221_s1, 2048, %s110_s19, [#allocation6], %s945_s25, %s945_s25, %s946_s26  }
  0x1f   : > { %p24_p2 = scmp.eq.s32.totalorder %s23_s23, 0  ;;  %p33_p9 = scmp.ne.s32.totalorder %s938_s11, %s934_s10 }
  0x20   : > { %p34_p11 = scmp.eq.s32.totalorder %s942_s12, 0  ;;  %p780_p12 = scmp.lt.s32.totalorder %s942_s12, 3 }
  0x21   : > { %s1039_s29 = scalar_select %p24_p2, %s938_s11, %s26_s22  }
  0x22   : > { %p35_p13 = por %p34_p11, %p33_p9  ;;  %p1231_p0 = scmp.eq.s32.totalorder %s987_s13, 2 }
  0x23   : > { %s123_s3 = sand.u32 1, %s938_s11   ;;  %s597_s4 = sshll.u32 %s942_s12, 12 }
  0x24   : > { %p1043_p3 = por %p1231_p0, %p33_p9  ;;  %s585_s5 = sshll.u32 %s123_s3, 8 }
  0x25   : > { %s1052_s8 = scalar_lea.hbm %s1220_s0, %s597_s4  ;;  %s127_s14 = scalar_lea.vmem [#allocation2], %s585_s5 }
  0x26   : > { %s1232_s30 = scalar_select %p1043_p3, 1, 0 }
  0x27   : > { %s134_s18 = sshll.u32 %s127_s14, 4  ;;  %p1054_p10 = pnand %p780_p12, %p35_p13  ;;  %s1058_s18 = int_to_ptr.vmem [resolvable:$true] %s134_s18 }
  0x28   : > { %s1060_s20 = scalar_lea.sflag [#allocation3], %s123_s3  ;;  %s846_s22 = scalar_lea.hbm %s1052_s8, 4096 }
  0x29   : > { %p847_p5 = scmp.ne.s32.totalorder %s1052_s8, %s846_s22  ;;  %p848_p7 = pneg %p1054_p10 }
  0x2a   : > { %s851_s27 = scalar_lea.hbm %s1220_s0, 12288  ;;  %p852_p11 = scmp.lt.s32.totalorder %s1052_s8, %s1220_s0 }
  0x2b   : > { %p849_p2 = pnand %p848_p7, %p847_p5  ;;  %p853_p12 = scmp.lt.s32.totalorder %s851_s27, %s846_s22 }
  0x2d   : > { %p850_p9 = pneg %p849_p2  ;;  %p854_p13 = por %p853_p12, %p852_p11 }
  0x2f   : > { %p855_p0 = pnand %p854_p13, %p850_p9 }
  0x31   : > { %858 = shalt.err (!%p855_p0)
}
  0x32   : > { %s859_s3 = scalar_lea.vmem %s1058_s18, 4096  ;;  %s947_s5 = smov [#allocation2]  }
  0x33   : > { %p860_p1 = scmp.ne.s32.totalorder %s1058_s18, %s859_s3  ;;  %s864_s6 = sshll.u32 %s947_s5, 4  ;;  %s865_s6 = int_to_ptr.vmem [resolvable:$false] %s864_s6 }
  0x34   : > { %s866_s7 = scalar_lea.vmem %s865_s6, 8192  ;;  %p867_p2 = scmp.lt.s32.totalorder %s1058_s18, %s865_s6 }
  0x35   : > { %p862_p6 = pnand %p860_p1, %p848_p7  ;;  %p868_p3 = scmp.lt.s32.totalorder %s866_s7, %s859_s3 }
  0x37   : > { %p863_p5 = pneg %p862_p6  ;;  %p869_p4 = por %p868_p3, %p867_p2 }
  0x39   : > { %p870_p8 = pnand %p869_p4, %p863_p5 }
  0x3b   : > { %873 = shalt.err (!%p870_p8)
}
  0x3c   : > { %774 = dma.hbm_to_vmem [thread:$0]  (!%p1054_p10), %s1052_s8, 4096, %s1058_s18, %s1060_s20, %s945_s25, %s945_s25, %s946_s26  }
  0x3d   : > { %p1234_p1 = scmp.ne.s32.totalorder %s1229_s17, 0 }
  0x3e   : > { %s1087_s14 = sand.u32 (!%p1234_p1), 1, %s934_s10   ;;  %p1235_p4 = scmp.ne.s32.totalorder (!%p1234_p1), %s1227_s15, 0 }
  0x3f   : > { %146 = sbr.rel (%p1234_p1) target bundleno = 343 (0x157), region = 28  ;;  %s589_s22 = sshll.u32 (!%p1234_p1), %s1087_s14, 8 }
  0x40   : > { %s149_s23 = scalar_lea.sflag (!%p1234_p1), [#allocation3], %s1087_s14  ;;  %s1093_s19 = scalar_lea.vmem (!%p1234_p1), [#allocation2], %s589_s22 }
  0x44   : > { %917 = dma.done.wait (%p1235_p4), %s149_s23, 4096  }
  0x45   : > { %919 = vsyncadd (%p1235_p4), %s149_s23, 4294963200  ;;  %p1236_p6 = scmp.eq.s32.totalorder %s987_s13, 0 }
  0x47   : > { %921 = dma.done.wait (%p1236_p6), [#allocation6], 2048   ;;  %p1237_p8 = pmov %p1236_p6 }
  0x48   : > { %v226_v0 = vld [vmem:[#allocation5 + $0x78] sm:$0xff]  ;;  %v225_v1 = vld [vmem:[#allocation5 + $0x70] sm:$0xff]  ;;  %v224_v2 = vld [vmem:[#allocation5 + $0x68] sm:$0xff]  ;;  %s1137_s15 = scalar_lea.vmem [#allocation7], %s589_s22  ;;  %s598_s17 = sshll.u32 %s987_s13, 12 }
  0x49   : > { %923 = vsyncadd (%p1237_p8), [#allocation6], 4294965248  ;;  %647 = vmatprep.subr.mxu0 %v226_v0  ;;  %727 = vmatprep.subr.mxu1 %v226_v0  ;;  %v223_v3 = vld [vmem:[#allocation5 + $0x60] sm:$0xff]  ;;  %v222_v4 = vld [vmem:[#allocation5 + $0x58] sm:$0xff]  ;;  %s498_s25 = sshll.u32 %s1137_s15, 4  ;;  %s1172_s18 = scalar_lea.hbm %s1222_s2, %s598_s17  ;;  %s1174_s25 = int_to_ptr.vmem [resolvable:$true] %s498_s25 }
  0x4a   : > { %648 = vmatpush3.msra.mxu0 %v226_v0  ;;  %743 = vmatpush3.msra.mxu1 %v226_v0  ;;  %v221_v5 = vld [vmem:[#allocation5 + $0x50] sm:$0xff]  ;;  %v220_v6 = vld [vmem:[#allocation5 + $0x48] sm:$0xff]  ;;  %v219_v7 = vld [vmem:[#allocation5 + $0x40] sm:$0xff]  ;;  %s485_s13 = scalar_lea.sflag [#allocation4], %s1087_s14  ;;  %s874_s20 = scalar_lea.vmem %s1174_s25, 4096 }
  0x4b   : > { %649 = vmatprep.subr.mxu0 %v225_v1  ;;  %728 = vmatprep.subr.mxu1 %v225_v1  ;;  %v218_v8 = vld [vmem:[#allocation5 + $0x38] sm:$0xff]  ;;  %v217_v9 = vld [vmem:[#allocation5 + $0x30] sm:$0xff]  ;;  %v216_v10 = vld [vmem:[#allocation5 + $0x28] sm:$0xff]  ;;  %p875_p3 = scmp.ne.s32.totalorder %s1174_s25, %s874_s20  ;;  %p1238_p10 = scmp.ne.s32.totalorder %s1232_s30, 0 }
  0x4c   : > { %650 = vmatpush3.msra.mxu0 %v225_v1  ;;  %744 = vmatpush3.msra.mxu1 %v225_v1  ;;  %v215_v11 = vld [vmem:[#allocation5 + $0x20] sm:$0xff]  ;;  %v214_v12 = vld [vmem:[#allocation5 + $0x18] sm:$0xff]  ;;  %v213_v13 = vld [vmem:[#allocation5 + $0x10] sm:$0xff]  ;;  %s948_s24 = smov [#allocation7]  }
  0x4d   : > { %651 = vmatprep.subr.mxu0 %v224_v2  ;;  %729 = vmatprep.subr.mxu1 %v224_v2  ;;  %v212_v14 = vld [vmem:[#allocation5 + $0x8] sm:$0xff]  ;;  %v211_v15 = vld [vmem:[#allocation5] sm:$0xff]  ;;  %v181_v20 = vld [vmem:[%s1093_s19 + $0x10] sm:$0xff]  ;;  %p876_p7 = pnand %p875_p3, %p1238_p10  ;;  %s878_s27 = sshll.u32 %s948_s24, 4  ;;  %s879_s27 = int_to_ptr.vmem [resolvable:$false] %s878_s27 }
  0x4e   : > { %652 = vmatpush3.msra.mxu0 %v224_v2  ;;  %745 = vmatpush3.msra.mxu1 %v224_v2  ;;  %v179_v16 = vld [vmem:[%s1093_s19] sm:$0xff]  ;;  %v180_v18 = vld [vmem:[%s1093_s19 + $0x8] sm:$0xff]  ;;  %v197_v21 = vld [vmem:[%s1093_s19 + $0x90] sm:$0xff]  ;;  %s880_s28 = scalar_lea.vmem %s879_s27, 8192  ;;  %p881_p11 = scmp.lt.s32.totalorder %s1174_s25, %s879_s27 }
  0x4f   : > { %653 = vmatprep.subr.mxu0 %v223_v3  ;;  %730 = vmatprep.subr.mxu1 %v223_v3  ;;  %v195_v17 = vld [vmem:[%s1093_s19 + $0x80] sm:$0xff]  ;;  %v196_v19 = vld [vmem:[%s1093_s19 + $0x88] sm:$0xff]  ;;  %v182_v22 = vld [vmem:[%s1093_s19 + $0x18] sm:$0xff]  ;;  %p877_p9 = pneg %p876_p7  ;;  %p882_p12 = scmp.lt.s32.totalorder %s880_s28, %s874_s20 }
  0x50   : > { %654 = vmatpush3.msra.mxu0 %v223_v3  ;;  %746 = vmatpush3.msra.mxu1 %v223_v3  ;;  %v198_v23 = vld [vmem:[%s1093_s19 + $0x98] sm:$0xff]  ;;  %v183_v24 = vld [vmem:[%s1093_s19 + $0x20] sm:$0xff]  ;;  %v184_v26 = vld [vmem:[%s1093_s19 + $0x28] sm:$0xff] }
  0x51   : > { %655 = vmatprep.subr.mxu0 %v222_v4  ;;  %731 = vmatprep.subr.mxu1 %v222_v4  ;;  %v199_v25 = vld [vmem:[%s1093_s19 + $0xa0] sm:$0xff]  ;;  %v200_v27 = vld [vmem:[%s1093_s19 + $0xa8] sm:$0xff]  ;;  %v185_v28 = vld [vmem:[%s1093_s19 + $0x30] sm:$0xff]  ;;  %p883_p13 = por %p882_p12, %p881_p11 }
  0x52   : > { %656 = vmatpush3.msra.mxu0 %v222_v4  ;;  %747 = vmatpush3.msra.mxu1 %v222_v4  ;;  %v201_v29 = vld [vmem:[%s1093_s19 + $0xb0] sm:$0xff]  ;;  %v186_v30 = vld [vmem:[%s1093_s19 + $0x38] sm:$0xff]  ;;  %v187_v32 = vld [vmem:[%s1093_s19 + $0x40] sm:$0xff] }
  0x53   : > { %657 = vmatprep.subr.mxu0 %v221_v5  ;;  %732 = vmatprep.subr.mxu1 %v221_v5  ;;  %v202_v31 = vld [vmem:[%s1093_s19 + $0xb8] sm:$0xff]  ;;  %v203_v33 = vld [vmem:[%s1093_s19 + $0xc0] sm:$0xff]  ;;  %v188_v34 = vld [vmem:[%s1093_s19 + $0x48] sm:$0xff]  ;;  %p884_p0 = pnand %p883_p13, %p877_p9 }
  0x54   : > { %658 = vmatpush3.msra.mxu0 %v221_v5  ;;  %748 = vmatpush3.msra.mxu1 %v221_v5  ;;  %v204_v35 = vld [vmem:[%s1093_s19 + $0xc8] sm:$0xff]  ;;  %v189_v36 = vld [vmem:[%s1093_s19 + $0x50] sm:$0xff]  ;;  %v190_v38 = vld [vmem:[%s1093_s19 + $0x58] sm:$0xff] }
  0x55   : > { %659 = vmatprep.subr.mxu0 %v220_v6  ;;  %733 = vmatprep.subr.mxu1 %v220_v6  ;;  %v205_v37 = vld [vmem:[%s1093_s19 + $0xd0] sm:$0xff]  ;;  %v206_v39 = vld [vmem:[%s1093_s19 + $0xd8] sm:$0xff]  ;;  %v191_v40 = vld [vmem:[%s1093_s19 + $0x60] sm:$0xff] }
  0x56   : > { %660 = vmatpush3.msra.mxu0 %v220_v6  ;;  %749 = vmatpush3.msra.mxu1 %v220_v6  ;;  %v207_v41 = vld [vmem:[%s1093_s19 + $0xe0] sm:$0xff]  ;;  %v192_v42 = vld [vmem:[%s1093_s19 + $0x68] sm:$0xff]  ;;  %v193_v44 = vld [vmem:[%s1093_s19 + $0x70] sm:$0xff] }
  0x57   : > { %661 = vmatprep.subr.mxu0 %v219_v7  ;;  %734 = vmatprep.subr.mxu1 %v219_v7  ;;  %v208_v43 = vld [vmem:[%s1093_s19 + $0xe8] sm:$0xff]  ;;  %v209_v45 = vld [vmem:[%s1093_s19 + $0xf0] sm:$0xff]  ;;  %v194_v46 = vld [vmem:[%s1093_s19 + $0x78] sm:$0xff] }
  0x58   : > { %662 = vmatpush3.msra.mxu0 %v219_v7  ;;  %750 = vmatpush3.msra.mxu1 %v219_v7  ;;  %v210_v47 = vld [vmem:[%s1093_s19 + $0xf8] sm:$0xff] }
  0x59   : > { %663 = vmatprep.subr.mxu0 %v218_v8  ;;  %735 = vmatprep.subr.mxu1 %v218_v8 }
  0x5a   : > { %664 = vmatpush3.msra.mxu0 %v218_v8  ;;  %751 = vmatpush3.msra.mxu1 %v218_v8 }
  0x5b   : > { %665 = vmatprep.subr.mxu0 %v217_v9  ;;  %736 = vmatprep.subr.mxu1 %v217_v9 }
  0x5c   : > { %666 = vmatpush3.msra.mxu0 %v217_v9  ;;  %752 = vmatpush3.msra.mxu1 %v217_v9 }
  0x5d   : > { %667 = vmatprep.subr.mxu0 %v216_v10  ;;  %737 = vmatprep.subr.mxu1 %v216_v10 }
  0x5e   : > { %668 = vmatpush3.msra.mxu0 %v216_v10  ;;  %753 = vmatpush3.msra.mxu1 %v216_v10 }
  0x5f   : > { %669 = vmatprep.subr.mxu0 %v215_v11  ;;  %738 = vmatprep.subr.mxu1 %v215_v11 }
  0x60   : > { %670 = vmatpush3.msra.mxu0 %v215_v11  ;;  %754 = vmatpush3.msra.mxu1 %v215_v11 }
  0x61   : > { %671 = vmatprep.subr.mxu0 %v214_v12  ;;  %739 = vmatprep.subr.mxu1 %v214_v12 }
  0x62   : > { %672 = vmatpush3.msra.mxu0 %v214_v12  ;;  %755 = vmatpush3.msra.mxu1 %v214_v12 }
  0x63   : > { %673 = vmatprep.subr.mxu0 %v213_v13  ;;  %740 = vmatprep.subr.mxu1 %v213_v13 }
  0x64   : > { %674 = vmatpush3.msra.mxu0 %v213_v13  ;;  %756 = vmatpush3.msra.mxu1 %v213_v13 }
  0x65   : > { %675 = vmatprep.subr.mxu0 %v212_v14  ;;  %741 = vmatprep.subr.mxu1 %v212_v14 }
  0x66   : > { %676 = vmatpush3.msra.mxu0 %v212_v14  ;;  %757 = vmatpush3.msra.mxu1 %v212_v14 }
  0x67   : > { %677 = vmatprep.subr.mxu0 %v211_v15  ;;  %742 = vmatprep.subr.mxu1 %v211_v15 }
  0x68   : > { %678 = vmatpush3.msra.mxu0 %v211_v15  ;;  %758 = vmatpush3.msra.mxu1 %v211_v15 }
  0x69   : > { %679 = vmatprep.mubr.f32.mxu0 %v179_v16  ;;  %703 = vmatprep.mubr.f32.mxu1 %v195_v17 }
  0x6a   : > { %680 = vmatmul.mubr.f32.vlgmr.msra.gmra.mxu0 %v180_v18  ;;  %704 = vmatmul.mubr.f32.vlgmr.msra.gmra.mxu1 %v196_v19 }
  0x6b   : > { %682 = vmatprep.mubr.f32.mxu0 %v181_v20  ;;  %706 = vmatprep.mubr.f32.mxu1 %v197_v21 }
  0x6e   : > { %683 = vmatmul.mubr.f32.gmra.mxu0 %v182_v22  ;;  %707 = vmatmul.mubr.f32.gmra.mxu1 %v198_v23 }
  0x6f   : > { %685 = vmatprep.mubr.f32.mxu0 %v183_v24  ;;  %709 = vmatprep.mubr.f32.mxu1 %v199_v25 }
  0x72   : > { %686 = vmatmul.mubr.f32.gmra.mxu0 %v184_v26  ;;  %710 = vmatmul.mubr.f32.gmra.mxu1 %v200_v27 }
  0x73   : > { %688 = vmatprep.mubr.f32.mxu0 %v185_v28  ;;  %712 = vmatprep.mubr.f32.mxu1 %v201_v29 }
  0x76   : > { %689 = vmatmul.mubr.f32.gmra.mxu0 %v186_v30  ;;  %713 = vmatmul.mubr.f32.gmra.mxu1 %v202_v31 }
  0x77   : > { %691 = vmatprep.mubr.f32.mxu0 %v187_v32  ;;  %715 = vmatprep.mubr.f32.mxu1 %v203_v33 }
  0x7a   : > { %692 = vmatmul.mubr.f32.gmra.mxu0 %v188_v34  ;;  %716 = vmatmul.mubr.f32.gmra.mxu1 %v204_v35 }
  0x7b   : > { %694 = vmatprep.mubr.f32.mxu0 %v189_v36  ;;  %718 = vmatprep.mubr.f32.mxu1 %v205_v37 }
  0x7e   : > { %695 = vmatmul.mubr.f32.gmra.mxu0 %v190_v38  ;;  %719 = vmatmul.mubr.f32.gmra.mxu1 %v206_v39 }
  0x7f   : > { %697 = vmatprep.mubr.f32.mxu0 %v191_v40  ;;  %721 = vmatprep.mubr.f32.mxu1 %v207_v41 }
  0x82   : > { %698 = vmatmul.mubr.f32.gmra.mxu0 %v192_v42  ;;  %722 = vmatmul.mubr.f32.gmra.mxu1 %v208_v43 }
  0x83   : > { %700 = vmatprep.mubr.f32.mxu0 %v193_v44  ;;  %724 = vmatprep.mubr.f32.mxu1 %v209_v45 }
  0x86   : > { %701 = vmatmul.mubr.f32.gmra.mxu0 %v194_v46  ;;  %725 = vmatmul.mubr.f32.gmra.mxu1 %v210_v47 }
 0x12a   : > { %v681_v48 = vpop.f32.mrf.mxu0  ;;  %v705_v49 = vpop.f32.mrf.mxu1 }
 0x12b   : > { %453 = vst [vmem:[%s1137_s15 + $0x8] sm:$0xff] %v681_v48  ;;  %469 = vst [vmem:[%s1137_s15 + $0x88] sm:$0xff] %v705_v49 }
 0x12c   : > { %v293_v50 = vpop.f32.mrf.mxu0  ;;  %v373_v51 = vpop.f32.mrf.mxu1 }
 0x12d   : > { %452 = vst [vmem:[%s1137_s15] sm:$0xff] %v293_v50  ;;  %468 = vst [vmem:[%s1137_s15 + $0x80] sm:$0xff] %v373_v51 }
 0x12e   : > { %v684_v52 = vpop.f32.mrf.mxu0  ;;  %v708_v53 = vpop.f32.mrf.mxu1 }
 0x12f   : > { %455 = vst [vmem:[%s1137_s15 + $0x18] sm:$0xff] %v684_v52  ;;  %471 = vst [vmem:[%s1137_s15 + $0x98] sm:$0xff] %v708_v53 }
 0x130   : > { %v303_v54 = vpop.f32.mrf.mxu0  ;;  %v383_v55 = vpop.f32.mrf.mxu1 }
 0x131   : > { %454 = vst [vmem:[%s1137_s15 + $0x10] sm:$0xff] %v303_v54  ;;  %470 = vst [vmem:[%s1137_s15 + $0x90] sm:$0xff] %v383_v55 }
 0x132   : > { %v687_v56 = vpop.f32.mrf.mxu0  ;;  %v711_v57 = vpop.f32.mrf.mxu1 }
 0x133   : > { %457 = vst [vmem:[%s1137_s15 + $0x28] sm:$0xff] %v687_v56  ;;  %473 = vst [vmem:[%s1137_s15 + $0xa8] sm:$0xff] %v711_v57 }
 0x134   : > { %v313_v58 = vpop.f32.mrf.mxu0  ;;  %v393_v59 = vpop.f32.mrf.mxu1 }
 0x135   : > { %456 = vst [vmem:[%s1137_s15 + $0x20] sm:$0xff] %v313_v58  ;;  %472 = vst [vmem:[%s1137_s15 + $0xa0] sm:$0xff] %v393_v59 }
 0x136   : > { %v690_v60 = vpop.f32.mrf.mxu0  ;;  %v714_v61 = vpop.f32.mrf.mxu1 }
 0x137   : > { %459 = vst [vmem:[%s1137_s15 + $0x38] sm:$0xff] %v690_v60  ;;  %475 = vst [vmem:[%s1137_s15 + $0xb8] sm:$0xff] %v714_v61 }
 0x138   : > { %v323_v62 = vpop.f32.mrf.mxu0  ;;  %v403_v63 = vpop.f32.mrf.mxu1 }
 0x139   : > { %458 = vst [vmem:[%s1137_s15 + $0x30] sm:$0xff] %v323_v62  ;;  %474 = vst [vmem:[%s1137_s15 + $0xb0] sm:$0xff] %v403_v63 }
 0x13a   : > { %v693_v0 = vpop.f32.mrf.mxu0  ;;  %v717_v1 = vpop.f32.mrf.mxu1 }
 0x13b   : > { %461 = vst [vmem:[%s1137_s15 + $0x48] sm:$0xff] %v693_v0  ;;  %477 = vst [vmem:[%s1137_s15 + $0xc8] sm:$0xff] %v717_v1 }
 0x13c   : > { %v333_v2 = vpop.f32.mrf.mxu0  ;;  %v413_v3 = vpop.f32.mrf.mxu1 }
 0x13d   : > { %460 = vst [vmem:[%s1137_s15 + $0x40] sm:$0xff] %v333_v2  ;;  %476 = vst [vmem:[%s1137_s15 + $0xc0] sm:$0xff] %v413_v3 }
 0x13e   : > { %v696_v4 = vpop.f32.mrf.mxu0  ;;  %v720_v5 = vpop.f32.mrf.mxu1 }
 0x13f   : > { %463 = vst [vmem:[%s1137_s15 + $0x58] sm:$0xff] %v696_v4  ;;  %479 = vst [vmem:[%s1137_s15 + $0xd8] sm:$0xff] %v720_v5 }
 0x140   : > { %v343_v6 = vpop.f32.mrf.mxu0  ;;  %v423_v7 = vpop.f32.mrf.mxu1 }
 0x141   : > { %462 = vst [vmem:[%s1137_s15 + $0x50] sm:$0xff] %v343_v6  ;;  %478 = vst [vmem:[%s1137_s15 + $0xd0] sm:$0xff] %v423_v7 }
 0x142   : > { %v699_v8 = vpop.f32.mrf.mxu0  ;;  %v723_v9 = vpop.f32.mrf.mxu1 }
 0x143   : > { %465 = vst [vmem:[%s1137_s15 + $0x68] sm:$0xff] %v699_v8  ;;  %481 = vst [vmem:[%s1137_s15 + $0xe8] sm:$0xff] %v723_v9 }
 0x144   : > { %v353_v10 = vpop.f32.mrf.mxu0  ;;  %v433_v11 = vpop.f32.mrf.mxu1 }
 0x145   : > { %464 = vst [vmem:[%s1137_s15 + $0x60] sm:$0xff] %v353_v10  ;;  %480 = vst [vmem:[%s1137_s15 + $0xe0] sm:$0xff] %v433_v11 }
 0x146   : > { %v702_v12 = vpop.f32.mrf.mxu0  ;;  %v726_v13 = vpop.f32.mrf.mxu1 }
 0x147   : > { %467 = vst [vmem:[%s1137_s15 + $0x78] sm:$0xff] %v702_v12  ;;  %483 = vst [vmem:[%s1137_s15 + $0xf8] sm:$0xff] %v726_v13 }
 0x148   : > { %v363_v14 = vpop.f32.mrf.mxu0  ;;  %v443_v15 = vpop.f32.mrf.mxu1 }
 0x149   : > { %466 = vst [vmem:[%s1137_s15 + $0x70] sm:$0xff] %v363_v14  ;;  %482 = vst [vmem:[%s1137_s15 + $0xf0] sm:$0xff] %v443_v15 }
 0x14a   : > { %887 = shalt.err (!%p884_p0)
}
 0x14b   : > { %s888_s4 = scalar_lea.hbm %s1172_s18, 4096  ;;  %s892_s6 = scalar_lea.hbm %s1222_s2, 12288 }
 0x14c   : > { %p889_p5 = scmp.ne.s32.totalorder %s1172_s18, %s888_s4  ;;  %p893_p4 = scmp.lt.s32.totalorder %s1172_s18, %s1222_s2 }
 0x14d   : > { %p894_p6 = scmp.lt.s32.totalorder %s892_s6, %s888_s4 }
 0x14e   : > { %p890_p2 = pnand %p889_p5, %p1238_p10 }
 0x14f   : > { %p895_p8 = por %p894_p6, %p893_p4 }
 0x150   : > { %p891_p1 = pneg %p890_p2 }
 0x152   : > { %p896_p3 = pnand %p895_p8, %p891_p1 }
 0x154   : > { %899 = shalt.err (!%p896_p3)
}
 0x155   : > { %s949_s23 = smov 128   ;;  %s950_s19 = smov 8  }
 0x156   : > { %765 = dma.vmem_to_hbm [thread:$0]  (%p1238_p10), %s1174_s25, 4096, %s1172_s18, %s485_s13, %s949_s23, %s949_s23, %s950_s19  }
 0x157 PF: > { %p782_p7 = scmp.ge.s32.totalorder %s942_s12, 2  ;;  %s513_s15 = sand.u32 1, %s930_s9  }
 0x158   : > { %p1239_p9 = scmp.ne.s32.totalorder %s1228_s16, 0  ;;  %s514_s17 = scalar_lea.sflag [#allocation4], %s513_s15 }
 0x15a   : > { %p776_p11 = pnand %p782_p7, %p1239_p9 }
 0x15c   : > { %p777_p12 = pneg %p776_p11 }
 0x15e   : > { %925 = dma.done.wait (%p777_p12), %s514_s17, 4096  }
 0x15f   : > { %927 = vsyncadd (%p777_p12), %s514_s17, 4294963200  ;;  %p16_p13 = scmp.ge.s32.totalorder %s1019_s21, 5   ;;  %s1240_s9 = smov %s934_s10 }
 0x160   : > { %s1241_s10 = smov %s938_s11  ;;  %s1242_s11 = smov %s1039_s29 }
 0x161   : > { %s1243_s12 = smov %s1019_s21  ;;  %18 = sbr.rel (!%p16_p13) target bundleno = 6 (0x6), region = 77 }
 0x166   :  { %519 = vsyncpa [#allocation3], 1 }
 0x167   :  { %521 = vsyncpa [#allocation3 + $0x1], 1 }
 0x168   :  { %522 = vsyncpa [#allocation6], 1 }
 0x169   :  { %523 = vsyncpa [#allocation4], 1 }
 0x16a   :  { %525 = vsyncpa [#allocation4 + $0x1], 1 }

</bundles_post_ra>
